<compile_context>
chip_gen: v5e
topology: v5e:2x2
jax: 0.10.0
libtpu: 0.0.40
codegen_flags: <defaults>
</compile_context>

<pallas_src>
import math
import numpy as np
import jax
import jax.numpy as jnp
from jax import lax
from jax.experimental import pallas as pl
from jax.experimental.pallas import tpu as pltpu

NUM_HEADS = 4
LN_EPS = 1e-5            # torch.nn.LayerNorm default eps
MASK_VALUE = -1000000.0  # masked_softmax fill value


def _layer_norm(x, gamma, beta):
    # fused moments: one pass computing sum and sum-of-squares
    n = x.shape[-1]
    s1 = jnp.sum(x, axis=-1, keepdims=True)
    s2 = jnp.sum(x * x, axis=-1, keepdims=True)
    mu = s1 * (1.0 / n)
    var = s2 * (1.0 / n) - mu * mu
    return (x - mu) * lax.rsqrt(var + LN_EPS) * gamma + beta


def _encoder_block_kernel(vl_ref,                     # (1, Bt*H, 1) int32
                          x_ref,                      # (Bt, S, E)
                          wqkv_ref, wo_ref,           # (E, 3E), (E, E)
                          w1_ref, b1_ref,             # (E, F), (1, F)
                          w2_ref, b2_ref,             # (F, E), (1, E)
                          g1_ref, be1_ref,            # (1, E) x2
                          g2_ref, be2_ref,            # (1, E) x2
                          o_ref):                     # (Bt, S, E)
    Bt, S, E = x_ref.shape
    H = NUM_HEADS
    D = E // H
    R = Bt * S
    BH = Bt * H

    x = x_ref[...].astype(jnp.float32)                # (Bt, S, E)
    xf = x.reshape(R, E)                              # row-flattened activations

    # Fused Q/K/V projection: one (R, E) @ (E, 3E) matmul.
    qkv = jnp.dot(xf, wqkv_ref[...], preferred_element_type=jnp.float32)  # (R, 3E)

    # Split heads (static lane slices) and build a head-major batched layout
    # (Bt*H, S, D) so the attention matmuls run as single batched streams.
    def heads(base):
        return jnp.stack(
            [qkv[:, base + h * D: base + (h + 1) * D].reshape(Bt, S, D)
             for h in range(H)],
            axis=1).reshape(BH, S, D)

    q = heads(0)
    k = heads(E)
    v = heads(2 * E)

    scale = 1.0 / math.sqrt(D)   # torch's d_model == per-head dim here
    s = jnp.einsum('bqd,bkd->bqk', q, k,
                   preferred_element_type=jnp.float32) * scale      # (BH, S, S)

    # Masked softmax. vl_ref already holds the per-(batch, head) valid length
    # (including the torch np.tile ordering quirk, computed in the wrapper).
    vl = vl_ref[0]                                                   # (BH, 1)
    col = lax.broadcasted_iota(jnp.int32, (BH, S, S), 2)
    s = jnp.where(col >= vl[:, :, None], MASK_VALUE, s)

    s = s - jnp.max(s, axis=-1, keepdims=True)
    p = jnp.exp(s)
    p = p * pl.reciprocal(jnp.sum(p, axis=-1, keepdims=True), approx=True)

    # Batched attention-weighted values, then back to row-major (R, E).
    attn = jnp.einsum('bqk,bkd->bqd', p, v,
                      preferred_element_type=jnp.float32)            # (BH, S, D)
    attn = attn.reshape(Bt, H, S, D)
    attn_rows = jnp.concatenate(
        [attn[:, h].reshape(R, D) for h in range(H)], axis=-1)       # (R, E)

    attn_out = jnp.dot(attn_rows, wo_ref[...],
                       preferred_element_type=jnp.float32)

    # AddNorm 1 (dropout == identity)
    y1 = _layer_norm(attn_out + xf, g1_ref[...], be1_ref[...])

    # PositionWiseFFN
    h1 = jnp.dot(y1, w1_ref[...], preferred_element_type=jnp.float32) + b1_ref[...]
    h1 = jnp.maximum(h1, 0.0)
    ffn = jnp.dot(h1, w2_ref[...], preferred_element_type=jnp.float32) + b2_ref[...]

    # AddNorm 2
    y2 = _layer_norm(ffn + y1, g2_ref[...], be2_ref[...])
    o_ref[...] = y2.reshape(Bt, S, E).astype(o_ref.dtype)


def _choose_block_b(B, S, E, F, H):
    """Largest divisor of B whose per-step activation footprint fits a budget."""
    budget = 8 * 1024 * 1024
    best = 1
    for bt in range(1, B + 1):
        if B % bt:
            continue
        est = 4 * bt * (2 * S * 3 * E + 3 * H * S * S + S * F + 6 * S * E)
        if est <= budget:
            best = bt
    return best


def encoder_block(x, params, valid_length=None, block_b=None):
    B, S, E = x.shape
    F = params["w1"].shape[1]
    H = NUM_HEADS
    assert E % H == 0

    if block_b is None:
        block_b = _choose_block_b(B, S, E, F, H)
    assert B % block_b == 0
    n_blocks = B // block_b

    # Fused QKV weight (E, 3E): [Wq | Wk | Wv].
    wqkv = jnp.concatenate([params["wq"], params["wk"], params["wv"]], axis=1)

    # Per-(batch, head) valid length, reproducing the torch np.tile quirk:
    # head h of batch b is masked with valid_length[(b*H + h) % B].
    # TODO(synk): 2-D valid_length (per-query lengths) not implemented.
    if valid_length is None:
        vl_bh = jnp.full((B * H,), S, dtype=jnp.int32)
    else:
        idx = jnp.arange(B * H, dtype=jnp.int32) % B
        vl_bh = valid_length.astype(jnp.int32)[idx]
    vl_bh = vl_bh.reshape(n_blocks, block_b * H, 1)

    def const(shape):
        n = len(shape)
        return pl.BlockSpec(shape, lambda i, n=n: (0,) * n)

    # NOTE: for realistic E/F on v7x (64 MiB VMEM), the constant-index weight
    # specs should additionally be single-buffered (pipeline_mode) and/or
    # stored in bf16; omitted here at toy sizes.
    in_specs = [
        pl.BlockSpec((1, block_b * H, 1), lambda i: (i, 0, 0)),   # vl per (b,h)
        pl.BlockSpec((block_b, S, E), lambda i: (i, 0, 0)),       # x
        const((E, 3 * E)),                                        # Wqkv
        const((E, E)),                                            # Wo
        const((E, F)), const((1, F)),                             # FFN1
        const((F, E)), const((1, E)),                             # FFN2
        const((1, E)), const((1, E)),                             # LN1 gamma/beta
        const((1, E)), const((1, E)),                             # LN2 gamma/beta
    ]
    out_specs = pl.BlockSpec((block_b, S, E), lambda i: (i, 0, 0))

    return pl.pallas_call(
        _encoder_block_kernel,
        out_shape=jax.ShapeDtypeStruct((B, S, E), jnp.float32),
        grid=(n_blocks,),
        in_specs=in_specs,
        out_specs=out_specs,
        compiler_params=pltpu.CompilerParams(
            dimension_semantics=("parallel",),          # batch blocks independent
            vmem_limit_bytes=48 * 1024 * 1024),
    )(vl_bh, x, wqkv, params["wo"],
      params["w1"], params["b1"], params["w2"], params["b2"],
      params["g1"], params["be1"], params["g2"], params["be2"])


# ------------------------ pure-JAX reference (mirrors the torch forward) -----
def reference(x, params, valid_length=None):
    B, S, E = x.shape
    H, D = NUM_HEADS, E // NUM_HEADS

    def split(t):  # (B,S,E) -> (B*H, S, D)
        return t.reshape(B, S, H, D).transpose(0, 2, 1, 3).reshape(B * H, S, D)

    Q = split(x @ params["wq"])
    K = split(x @ params["wk"])
    V = split(x @ params["wv"])
    scores = jnp.einsum("bij,bkj->bik", Q, K) / math.sqrt(D)
    if valid_length is not None:
        vl_tiled = jnp.tile(valid_length.astype(jnp.int32), H)   # np.tile semantics
        mask = jnp.arange(S)[None, None, :] >= vl_tiled[:, None, None]
        scores = jnp.where(mask, MASK_VALUE, scores)
    w = jax.nn.softmax(scores, axis=-1)
    out = jnp.einsum("bik,bkd->bid", w, V)
    out = out.reshape(B, H, S, D).transpose(0, 2, 1, 3).reshape(B, S, E)
    attn_out = out @ params["wo"]

    def ln(t, g, be):
        mu = jnp.mean(t, axis=-1, keepdims=True)
        var = jnp.mean((t - mu) ** 2, axis=-1, keepdims=True)
        return (t - mu) / jnp.sqrt(var + LN_EPS) * g + be

    y1 = ln(attn_out + x, params["g1"], params["be1"])
    h1 = jnp.maximum(y1 @ params["w1"] + params["b1"], 0.0)
    ffn = h1 @ params["w2"] + params["b2"]
    return ln(ffn + y1, params["g2"], params["be2"])


def init_params(key, E, F):
    ks = jax.random.split(key, 8)
    s = 0.05
    return dict(
        wq=s * jax.random.normal(ks[0], (E, E), jnp.float32),
        wk=s * jax.random.normal(ks[1], (E, E), jnp.float32),
        wv=s * jax.random.normal(ks[2], (E, E), jnp.float32),
        wo=s * jax.random.normal(ks[3], (E, E), jnp.float32),
        w1=s * jax.random.normal(ks[4], (E, F), jnp.float32),
        b1=s * jax.random.normal(ks[5], (1, F), jnp.float32),
        w2=s * jax.random.normal(ks[6], (F, E), jnp.float32),
        b2=s * jax.random.normal(ks[7], (1, E), jnp.float32),
        g1=jnp.ones((1, E), jnp.float32), be1=jnp.zeros((1, E), jnp.float32),
        g2=jnp.ones((1, E), jnp.float32), be2=jnp.zeros((1, E), jnp.float32),
    )


if __name__ == "__main__":
    B, S, E, F = 2, 8, 32, 64
    key = jax.random.PRNGKey(0)
    kx, kp = jax.random.split(key)
    x = jax.random.normal(kx, (B, S, E), jnp.float32)
    params = init_params(kp, E, F)

    # Tolerances are looser than pure-f32 matching because the kernel uses the
    # hardware approximate reciprocal (EUP) for the softmax normalization.
    TOL = dict(rtol=5e-3, atol=5e-3)

    # case 1: valid_length = None (module default)
    out = jax.block_until_ready(encoder_block(x, params, None))
    ref = reference(x, params, None)
    np.testing.assert_allclose(np.asarray(out), np.asarray(ref), **TOL)

    # case 2: 1-D valid_length masking
    vl = jnp.array([5, 7], dtype=jnp.int32)
    out_m = jax.block_until_ready(encoder_block(x, params, vl))
    ref_m = reference(x, params, vl)
    np.testing.assert_allclose(np.asarray(out_m), np.asarray(ref_m), **TOL)

    print("KERNEL_OK")
</pallas_src>

<mosaic_0001>
module attributes {stable_mosaic.version = 11 : i64} {
  func.func @_encoder_block_kernel(%arg0: i32, %arg1: memref<1x8x1xi32, #tpu.memory_space<vmem>>, %arg2: memref<2x8x32xf32, #tpu.memory_space<vmem>>, %arg3: memref<32x96xf32, #tpu.memory_space<vmem>>, %arg4: memref<32x32xf32, #tpu.memory_space<vmem>>, %arg5: memref<32x64xf32, #tpu.memory_space<vmem>>, %arg6: memref<1x64xf32, #tpu.memory_space<vmem>>, %arg7: memref<64x32xf32, #tpu.memory_space<vmem>>, %arg8: memref<1x32xf32, #tpu.memory_space<vmem>>, %arg9: memref<1x32xf32, #tpu.memory_space<vmem>>, %arg10: memref<1x32xf32, #tpu.memory_space<vmem>>, %arg11: memref<1x32xf32, #tpu.memory_space<vmem>>, %arg12: memref<1x32xf32, #tpu.memory_space<vmem>>, %arg13: memref<2x8x32xf32, #tpu.memory_space<vmem>>) attributes {dimension_semantics = [#tpu.dimension_semantics<parallel>], iteration_bounds = array<i64: 1>, scalar_prefetch = 0 : i64, scratch_operands = 0 : i64, tpu.core_type = #tpu.core_type<tc>, window_params = [{transform_indices = @transform_0, window_bounds = array<i64: 1, 8, 1>}, {transform_indices = @transform_1, window_bounds = array<i64: 2, 8, 32>}, {pipeline_mode = #tpu.pipeline_mode<synchronous>, transform_indices = @transform_2, window_bounds = array<i64: 32, 96>}, {pipeline_mode = #tpu.pipeline_mode<synchronous>, transform_indices = @transform_3, window_bounds = array<i64: 32, 32>}, {pipeline_mode = #tpu.pipeline_mode<synchronous>, transform_indices = @transform_4, window_bounds = array<i64: 32, 64>}, {pipeline_mode = #tpu.pipeline_mode<synchronous>, transform_indices = @transform_5, window_bounds = array<i64: 1, 64>}, {pipeline_mode = #tpu.pipeline_mode<synchronous>, transform_indices = @transform_6, window_bounds = array<i64: 64, 32>}, {pipeline_mode = #tpu.pipeline_mode<synchronous>, transform_indices = @transform_7, window_bounds = array<i64: 1, 32>}, {pipeline_mode = #tpu.pipeline_mode<synchronous>, transform_indices = @transform_8, window_bounds = array<i64: 1, 32>}, {pipeline_mode = #tpu.pipeline_mode<synchronous>, transform_indices = @transform_9, window_bounds = array<i64: 1, 32>}, {pipeline_mode = #tpu.pipeline_mode<synchronous>, transform_indices = @transform_10, window_bounds = array<i64: 1, 32>}, {pipeline_mode = #tpu.pipeline_mode<synchronous>, transform_indices = @transform_11, window_bounds = array<i64: 1, 32>}, {transform_indices = @transform_12, window_bounds = array<i64: 2, 8, 32>}]} {
    %c0 = arith.constant 0 : index
    %c0_0 = arith.constant 0 : index
    %c0_1 = arith.constant 0 : index
    %0 = vector.load %arg2[%c0, %c0_0, %c0_1] : memref<2x8x32xf32, #tpu.memory_space<vmem>>, vector<2x8x32xf32>
    %1 = vector.shape_cast %0 : vector<2x8x32xf32> to vector<16x32xf32>
    %c0_2 = arith.constant 0 : index
    %c0_3 = arith.constant 0 : index
    %2 = vector.load %arg3[%c0_2, %c0_3] : memref<32x96xf32, #tpu.memory_space<vmem>>, vector<32x96xf32>
    %cst = arith.constant dense<0.000000e+00> : vector<16x96xf32>
    %3 = tpu.matmul %1, %2, %cst {dimension_numbers = #tpu.dot_dimension_numbers<[1], [0], [0], [1], [0, 0, 1, 1], [], []>} : vector<16x32xf32>, vector<32x96xf32>, vector<16x96xf32> -> vector<16x96xf32>
    %4 = vector.extract_strided_slice %3 {offsets = [0, 0], sizes = [16, 8], strides = [1, 1]} : vector<16x96xf32> to vector<16x8xf32>
    %5 = vector.shape_cast %4 : vector<16x8xf32> to vector<2x8x8xf32>
    %6 = vector.extract_strided_slice %3 {offsets = [0, 8], sizes = [16, 8], strides = [1, 1]} : vector<16x96xf32> to vector<16x8xf32>
    %7 = vector.shape_cast %6 : vector<16x8xf32> to vector<2x8x8xf32>
    %8 = vector.extract_strided_slice %3 {offsets = [0, 16], sizes = [16, 8], strides = [1, 1]} : vector<16x96xf32> to vector<16x8xf32>
    %9 = vector.shape_cast %8 : vector<16x8xf32> to vector<2x8x8xf32>
    %10 = vector.extract_strided_slice %3 {offsets = [0, 24], sizes = [16, 8], strides = [1, 1]} : vector<16x96xf32> to vector<16x8xf32>
    %11 = vector.shape_cast %10 : vector<16x8xf32> to vector<2x8x8xf32>
    %12 = vector.shape_cast %5 : vector<2x8x8xf32> to vector<2x1x8x8xf32>
    %13 = vector.shape_cast %7 : vector<2x8x8xf32> to vector<2x1x8x8xf32>
    %14 = vector.shape_cast %9 : vector<2x8x8xf32> to vector<2x1x8x8xf32>
    %15 = vector.shape_cast %11 : vector<2x8x8xf32> to vector<2x1x8x8xf32>
    %16 = tpu.concatenate %12, %13, %14, %15 in 1 : vector<2x1x8x8xf32>, vector<2x1x8x8xf32>, vector<2x1x8x8xf32>, vector<2x1x8x8xf32> -> vector<2x4x8x8xf32>
    %17 = vector.shape_cast %16 : vector<2x4x8x8xf32> to vector<8x8x8xf32>
    %18 = vector.extract_strided_slice %3 {offsets = [0, 32], sizes = [16, 8], strides = [1, 1]} : vector<16x96xf32> to vector<16x8xf32>
    %19 = vector.shape_cast %18 : vector<16x8xf32> to vector<2x8x8xf32>
    %20 = vector.extract_strided_slice %3 {offsets = [0, 40], sizes = [16, 8], strides = [1, 1]} : vector<16x96xf32> to vector<16x8xf32>
    %21 = vector.shape_cast %20 : vector<16x8xf32> to vector<2x8x8xf32>
    %22 = vector.extract_strided_slice %3 {offsets = [0, 48], sizes = [16, 8], strides = [1, 1]} : vector<16x96xf32> to vector<16x8xf32>
    %23 = vector.shape_cast %22 : vector<16x8xf32> to vector<2x8x8xf32>
    %24 = vector.extract_strided_slice %3 {offsets = [0, 56], sizes = [16, 8], strides = [1, 1]} : vector<16x96xf32> to vector<16x8xf32>
    %25 = vector.shape_cast %24 : vector<16x8xf32> to vector<2x8x8xf32>
    %26 = vector.shape_cast %19 : vector<2x8x8xf32> to vector<2x1x8x8xf32>
    %27 = vector.shape_cast %21 : vector<2x8x8xf32> to vector<2x1x8x8xf32>
    %28 = vector.shape_cast %23 : vector<2x8x8xf32> to vector<2x1x8x8xf32>
    %29 = vector.shape_cast %25 : vector<2x8x8xf32> to vector<2x1x8x8xf32>
    %30 = tpu.concatenate %26, %27, %28, %29 in 1 : vector<2x1x8x8xf32>, vector<2x1x8x8xf32>, vector<2x1x8x8xf32>, vector<2x1x8x8xf32> -> vector<2x4x8x8xf32>
    %31 = vector.shape_cast %30 : vector<2x4x8x8xf32> to vector<8x8x8xf32>
    %32 = vector.extract_strided_slice %3 {offsets = [0, 64], sizes = [16, 8], strides = [1, 1]} : vector<16x96xf32> to vector<16x8xf32>
    %33 = vector.shape_cast %32 : vector<16x8xf32> to vector<2x8x8xf32>
    %34 = vector.extract_strided_slice %3 {offsets = [0, 72], sizes = [16, 8], strides = [1, 1]} : vector<16x96xf32> to vector<16x8xf32>
    %35 = vector.shape_cast %34 : vector<16x8xf32> to vector<2x8x8xf32>
    %36 = vector.extract_strided_slice %3 {offsets = [0, 80], sizes = [16, 8], strides = [1, 1]} : vector<16x96xf32> to vector<16x8xf32>
    %37 = vector.shape_cast %36 : vector<16x8xf32> to vector<2x8x8xf32>
    %38 = vector.extract_strided_slice %3 {offsets = [0, 88], sizes = [16, 8], strides = [1, 1]} : vector<16x96xf32> to vector<16x8xf32>
    %39 = vector.shape_cast %38 : vector<16x8xf32> to vector<2x8x8xf32>
    %40 = vector.shape_cast %33 : vector<2x8x8xf32> to vector<2x1x8x8xf32>
    %41 = vector.shape_cast %35 : vector<2x8x8xf32> to vector<2x1x8x8xf32>
    %42 = vector.shape_cast %37 : vector<2x8x8xf32> to vector<2x1x8x8xf32>
    %43 = vector.shape_cast %39 : vector<2x8x8xf32> to vector<2x1x8x8xf32>
    %44 = tpu.concatenate %40, %41, %42, %43 in 1 : vector<2x1x8x8xf32>, vector<2x1x8x8xf32>, vector<2x1x8x8xf32>, vector<2x1x8x8xf32> -> vector<2x4x8x8xf32>
    %45 = vector.shape_cast %44 : vector<2x4x8x8xf32> to vector<8x8x8xf32>
    "tpu.trace_start"() <{level = 10 : i32, message = "bqd,bkd->bqk"}> : () -> ()
    %cst_4 = arith.constant dense<0.000000e+00> : vector<8x8x8xf32>
    %46 = tpu.matmul %17, %31, %cst_4 {dimension_numbers = #tpu.dot_dimension_numbers<[2], [2], [1], [1], [0, 0, 0, 1, 1, 1], [0], [0]>} : vector<8x8x8xf32>, vector<8x8x8xf32>, vector<8x8x8xf32> -> vector<8x8x8xf32>
    "tpu.trace_stop"() : () -> ()
    %cst_5 = arith.constant 0.353553385 : f32
    %47 = vector.broadcast %cst_5 : f32 to vector<8x8x8xf32>
    %48 = arith.mulf %46, %47 : vector<8x8x8xf32>
    %c0_6 = arith.constant 0 : index
    %c0_7 = arith.constant 0 : index
    %c0_8 = arith.constant 0 : index
    %49 = vector.load %arg1[%c0_6, %c0_7, %c0_8] : memref<1x8x1xi32, #tpu.memory_space<vmem>>, vector<1x8x1xi32>
    %50 = vector.shape_cast %49 : vector<1x8x1xi32> to vector<8x1xi32>
    %51 = tpu.iota {dimensions = array<i32: 2>} : vector<8x8x8xi32>
    %52 = vector.shape_cast %50 : vector<8x1xi32> to vector<8x1x1xi32>
    %53 = vector.broadcast %52 : vector<8x1x1xi32> to vector<8x8x8xi32>
    %54 = arith.cmpi sge, %51, %53 : vector<8x8x8xi32>
    %cst_9 = arith.constant -1.000000e+06 : f32
    %55 = vector.broadcast %cst_9 : f32 to vector<8x8x8xf32>
    %56 = arith.select %54, %55, %48 : vector<8x8x8xi1>, vector<8x8x8xf32>
    %cst_10 = arith.constant dense<0xFF800000> : vector<8x8xf32>
    %57 = vector.multi_reduction <maximumf>, %56, %cst_10 [2] : vector<8x8x8xf32> to vector<8x8xf32>
    %58 = vector.shape_cast %57 : vector<8x8xf32> to vector<8x8x1xf32>
    %59 = vector.broadcast %58 : vector<8x8x1xf32> to vector<8x8x8xf32>
    %60 = arith.subf %56, %59 : vector<8x8x8xf32>
    %61 = math.exp %60 : vector<8x8x8xf32>
    %cst_11 = arith.constant dense<0.000000e+00> : vector<8x8xf32>
    %62 = vector.multi_reduction <add>, %61, %cst_11 [2] : vector<8x8x8xf32> to vector<8x8xf32>
    %63 = vector.shape_cast %62 : vector<8x8xf32> to vector<8x8x1xf32>
    %64 = tpu.reciprocal %63 {approx = true} : vector<8x8x1xf32> -> vector<8x8x1xf32>
    %65 = vector.broadcast %64 : vector<8x8x1xf32> to vector<8x8x8xf32>
    %66 = arith.mulf %61, %65 : vector<8x8x8xf32>
    "tpu.trace_start"() <{level = 10 : i32, message = "bqk,bkd->bqd"}> : () -> ()
    %cst_12 = arith.constant dense<0.000000e+00> : vector<8x8x8xf32>
    %67 = tpu.matmul %66, %45, %cst_12 {dimension_numbers = #tpu.dot_dimension_numbers<[2], [1], [1], [2], [0, 0, 0, 1, 1, 2], [0], [0]>} : vector<8x8x8xf32>, vector<8x8x8xf32>, vector<8x8x8xf32> -> vector<8x8x8xf32>
    "tpu.trace_stop"() : () -> ()
    %68 = vector.shape_cast %67 : vector<8x8x8xf32> to vector<2x4x8x8xf32>
    %69 = vector.extract_strided_slice %68 {offsets = [0, 0, 0, 0], sizes = [2, 1, 8, 8], strides = [1, 1, 1, 1]} : vector<2x4x8x8xf32> to vector<2x1x8x8xf32>
    %70 = vector.shape_cast %69 : vector<2x1x8x8xf32> to vector<2x8x8xf32>
    %71 = vector.shape_cast %70 : vector<2x8x8xf32> to vector<16x8xf32>
    %72 = vector.extract_strided_slice %68 {offsets = [0, 1, 0, 0], sizes = [2, 1, 8, 8], strides = [1, 1, 1, 1]} : vector<2x4x8x8xf32> to vector<2x1x8x8xf32>
    %73 = vector.shape_cast %72 : vector<2x1x8x8xf32> to vector<2x8x8xf32>
    %74 = vector.shape_cast %73 : vector<2x8x8xf32> to vector<16x8xf32>
    %75 = vector.extract_strided_slice %68 {offsets = [0, 2, 0, 0], sizes = [2, 1, 8, 8], strides = [1, 1, 1, 1]} : vector<2x4x8x8xf32> to vector<2x1x8x8xf32>
    %76 = vector.shape_cast %75 : vector<2x1x8x8xf32> to vector<2x8x8xf32>
    %77 = vector.shape_cast %76 : vector<2x8x8xf32> to vector<16x8xf32>
    %78 = vector.extract_strided_slice %68 {offsets = [0, 3, 0, 0], sizes = [2, 1, 8, 8], strides = [1, 1, 1, 1]} : vector<2x4x8x8xf32> to vector<2x1x8x8xf32>
    %79 = vector.shape_cast %78 : vector<2x1x8x8xf32> to vector<2x8x8xf32>
    %80 = vector.shape_cast %79 : vector<2x8x8xf32> to vector<16x8xf32>
    %81 = tpu.concatenate %71, %74, %77, %80 in 1 : vector<16x8xf32>, vector<16x8xf32>, vector<16x8xf32>, vector<16x8xf32> -> vector<16x32xf32>
    %c0_13 = arith.constant 0 : index
    %c0_14 = arith.constant 0 : index
    %82 = vector.load %arg4[%c0_13, %c0_14] : memref<32x32xf32, #tpu.memory_space<vmem>>, vector<32x32xf32>
    %cst_15 = arith.constant dense<0.000000e+00> : vector<16x32xf32>
    %83 = tpu.matmul %81, %82, %cst_15 {dimension_numbers = #tpu.dot_dimension_numbers<[1], [0], [0], [1], [0, 0, 1, 1], [], []>} : vector<16x32xf32>, vector<32x32xf32>, vector<16x32xf32> -> vector<16x32xf32>
    %84 = arith.addf %83, %1 : vector<16x32xf32>
    %c0_16 = arith.constant 0 : index
    %c0_17 = arith.constant 0 : index
    %85 = vector.load %arg9[%c0_16, %c0_17] : memref<1x32xf32, #tpu.memory_space<vmem>>, vector<1x32xf32>
    %c0_18 = arith.constant 0 : index
    %c0_19 = arith.constant 0 : index
    %86 = vector.load %arg10[%c0_18, %c0_19] : memref<1x32xf32, #tpu.memory_space<vmem>>, vector<1x32xf32>
    %cst_20 = arith.constant dense<0.000000e+00> : vector<16xf32>
    %87 = vector.multi_reduction <add>, %84, %cst_20 [1] : vector<16x32xf32> to vector<16xf32>
    %88 = vector.shape_cast %87 : vector<16xf32> to vector<16x1xf32>
    %89 = arith.mulf %84, %84 : vector<16x32xf32>
    %cst_21 = arith.constant dense<0.000000e+00> : vector<16xf32>
    %90 = vector.multi_reduction <add>, %89, %cst_21 [1] : vector<16x32xf32> to vector<16xf32>
    %91 = vector.shape_cast %90 : vector<16xf32> to vector<16x1xf32>
    %cst_22 = arith.constant 3.125000e-02 : f32
    %92 = vector.broadcast %cst_22 : f32 to vector<16x1xf32>
    %93 = arith.mulf %88, %92 : vector<16x1xf32>
    %cst_23 = arith.constant 3.125000e-02 : f32
    %94 = vector.broadcast %cst_23 : f32 to vector<16x1xf32>
    %95 = arith.mulf %91, %94 : vector<16x1xf32>
    %96 = arith.mulf %93, %93 : vector<16x1xf32>
    %97 = arith.subf %95, %96 : vector<16x1xf32>
    %98 = vector.broadcast %93 : vector<16x1xf32> to vector<16x32xf32>
    %99 = arith.subf %84, %98 : vector<16x32xf32>
    %cst_24 = arith.constant 9.99999974E-6 : f32
    %100 = vector.broadcast %cst_24 : f32 to vector<16x1xf32>
    %101 = arith.addf %97, %100 : vector<16x1xf32>
    %102 = math.rsqrt %101 : vector<16x1xf32>
    %103 = vector.broadcast %102 : vector<16x1xf32> to vector<16x32xf32>
    %104 = arith.mulf %99, %103 : vector<16x32xf32>
    %105 = vector.broadcast %85 : vector<1x32xf32> to vector<16x32xf32>
    %106 = arith.mulf %104, %105 : vector<16x32xf32>
    %107 = vector.broadcast %86 : vector<1x32xf32> to vector<16x32xf32>
    %108 = arith.addf %106, %107 : vector<16x32xf32>
    %c0_25 = arith.constant 0 : index
    %c0_26 = arith.constant 0 : index
    %109 = vector.load %arg5[%c0_25, %c0_26] : memref<32x64xf32, #tpu.memory_space<vmem>>, vector<32x64xf32>
    %cst_27 = arith.constant dense<0.000000e+00> : vector<16x64xf32>
    %110 = tpu.matmul %108, %109, %cst_27 {dimension_numbers = #tpu.dot_dimension_numbers<[1], [0], [0], [1], [0, 0, 1, 1], [], []>} : vector<16x32xf32>, vector<32x64xf32>, vector<16x64xf32> -> vector<16x64xf32>
    %c0_28 = arith.constant 0 : index
    %c0_29 = arith.constant 0 : index
    %111 = vector.load %arg6[%c0_28, %c0_29] : memref<1x64xf32, #tpu.memory_space<vmem>>, vector<1x64xf32>
    %112 = vector.broadcast %111 : vector<1x64xf32> to vector<16x64xf32>
    %113 = arith.addf %110, %112 : vector<16x64xf32>
    %cst_30 = arith.constant 0.000000e+00 : f32
    %114 = vector.broadcast %cst_30 : f32 to vector<16x64xf32>
    %115 = arith.maximumf %113, %114 : vector<16x64xf32>
    %c0_31 = arith.constant 0 : index
    %c0_32 = arith.constant 0 : index
    %116 = vector.load %arg7[%c0_31, %c0_32] : memref<64x32xf32, #tpu.memory_space<vmem>>, vector<64x32xf32>
    %cst_33 = arith.constant dense<0.000000e+00> : vector<16x32xf32>
    %117 = tpu.matmul %115, %116, %cst_33 {dimension_numbers = #tpu.dot_dimension_numbers<[1], [0], [0], [1], [0, 0, 1, 1], [], []>} : vector<16x64xf32>, vector<64x32xf32>, vector<16x32xf32> -> vector<16x32xf32>
    %c0_34 = arith.constant 0 : index
    %c0_35 = arith.constant 0 : index
    %118 = vector.load %arg8[%c0_34, %c0_35] : memref<1x32xf32, #tpu.memory_space<vmem>>, vector<1x32xf32>
    %119 = vector.broadcast %118 : vector<1x32xf32> to vector<16x32xf32>
    %120 = arith.addf %117, %119 : vector<16x32xf32>
    %121 = arith.addf %120, %108 : vector<16x32xf32>
    %c0_36 = arith.constant 0 : index
    %c0_37 = arith.constant 0 : index
    %122 = vector.load %arg11[%c0_36, %c0_37] : memref<1x32xf32, #tpu.memory_space<vmem>>, vector<1x32xf32>
    %c0_38 = arith.constant 0 : index
    %c0_39 = arith.constant 0 : index
    %123 = vector.load %arg12[%c0_38, %c0_39] : memref<1x32xf32, #tpu.memory_space<vmem>>, vector<1x32xf32>
    %cst_40 = arith.constant dense<0.000000e+00> : vector<16xf32>
    %124 = vector.multi_reduction <add>, %121, %cst_40 [1] : vector<16x32xf32> to vector<16xf32>
    %125 = vector.shape_cast %124 : vector<16xf32> to vector<16x1xf32>
    %126 = arith.mulf %121, %121 : vector<16x32xf32>
    %cst_41 = arith.constant dense<0.000000e+00> : vector<16xf32>
    %127 = vector.multi_reduction <add>, %126, %cst_41 [1] : vector<16x32xf32> to vector<16xf32>
    %128 = vector.shape_cast %127 : vector<16xf32> to vector<16x1xf32>
    %cst_42 = arith.constant 3.125000e-02 : f32
    %129 = vector.broadcast %cst_42 : f32 to vector<16x1xf32>
    %130 = arith.mulf %125, %129 : vector<16x1xf32>
    %cst_43 = arith.constant 3.125000e-02 : f32
    %131 = vector.broadcast %cst_43 : f32 to vector<16x1xf32>
    %132 = arith.mulf %128, %131 : vector<16x1xf32>
    %133 = arith.mulf %130, %130 : vector<16x1xf32>
    %134 = arith.subf %132, %133 : vector<16x1xf32>
    %135 = vector.broadcast %130 : vector<16x1xf32> to vector<16x32xf32>
    %136 = arith.subf %121, %135 : vector<16x32xf32>
    %cst_44 = arith.constant 9.99999974E-6 : f32
    %137 = vector.broadcast %cst_44 : f32 to vector<16x1xf32>
    %138 = arith.addf %134, %137 : vector<16x1xf32>
    %139 = math.rsqrt %138 : vector<16x1xf32>
    %140 = vector.broadcast %139 : vector<16x1xf32> to vector<16x32xf32>
    %141 = arith.mulf %136, %140 : vector<16x32xf32>
    %142 = vector.broadcast %122 : vector<1x32xf32> to vector<16x32xf32>
    %143 = arith.mulf %141, %142 : vector<16x32xf32>
    %144 = vector.broadcast %123 : vector<1x32xf32> to vector<16x32xf32>
    %145 = arith.addf %143, %144 : vector<16x32xf32>
    %146 = vector.shape_cast %145 : vector<16x32xf32> to vector<2x8x32xf32>
    %c0_45 = arith.constant 0 : index
    %c0_46 = arith.constant 0 : index
    %c0_47 = arith.constant 0 : index
    %147 = vector.load %arg13[%c0_45, %c0_46, %c0_47] : memref<2x8x32xf32, #tpu.memory_space<vmem>>, vector<2x8x32xf32>
    tpu.vector_store %arg13[%c0_45, %c0_46, %c0_47], %146 {strides = array<i32>} : memref<2x8x32xf32, #tpu.memory_space<vmem>>, vector<2x8x32xf32>,
    return
  }
  func.func @transform_0(%arg0: i32) -> (i32, i32, i32) {
    %c0_i32 = arith.constant 0 : i32
    %c0_i32_0 = arith.constant 0 : i32
    %c0_i32_1 = arith.constant 0 : i32
    return %arg0, %c0_i32, %c0_i32_0 : i32, i32, i32
  }
  func.func @transform_1(%arg0: i32) -> (i32, i32, i32) {
    %c0_i32 = arith.constant 0 : i32
    %c0_i32_0 = arith.constant 0 : i32
    %c0_i32_1 = arith.constant 0 : i32
    return %arg0, %c0_i32, %c0_i32_0 : i32, i32, i32
  }
  func.func @transform_2(%arg0: i32) -> (i32, i32) {
    %c0_i32 = arith.constant 0 : i32
    %c0_i32_0 = arith.constant 0 : i32
    %c0_i32_1 = arith.constant 0 : i32
    return %c0_i32, %c0_i32_0 : i32, i32
  }
  func.func @transform_3(%arg0: i32) -> (i32, i32) {
    %c0_i32 = arith.constant 0 : i32
    %c0_i32_0 = arith.constant 0 : i32
    %c0_i32_1 = arith.constant 0 : i32
    return %c0_i32, %c0_i32_0 : i32, i32
  }
  func.func @transform_4(%arg0: i32) -> (i32, i32) {
    %c0_i32 = arith.constant 0 : i32
    %c0_i32_0 = arith.constant 0 : i32
    %c0_i32_1 = arith.constant 0 : i32
    return %c0_i32, %c0_i32_0 : i32, i32
  }
  func.func @transform_5(%arg0: i32) -> (i32, i32) {
    %c0_i32 = arith.constant 0 : i32
    %c0_i32_0 = arith.constant 0 : i32
    %c0_i32_1 = arith.constant 0 : i32
    return %c0_i32, %c0_i32_0 : i32, i32
  }
  func.func @transform_6(%arg0: i32) -> (i32, i32) {
    %c0_i32 = arith.constant 0 : i32
    %c0_i32_0 = arith.constant 0 : i32
    %c0_i32_1 = arith.constant 0 : i32
    return %c0_i32, %c0_i32_0 : i32, i32
  }
  func.func @transform_7(%arg0: i32) -> (i32, i32) {
    %c0_i32 = arith.constant 0 : i32
    %c0_i32_0 = arith.constant 0 : i32
    %c0_i32_1 = arith.constant 0 : i32
    return %c0_i32, %c0_i32_0 : i32, i32
  }
  func.func @transform_8(%arg0: i32) -> (i32, i32) {
    %c0_i32 = arith.constant 0 : i32
    %c0_i32_0 = arith.constant 0 : i32
    %c0_i32_1 = arith.constant 0 : i32
    return %c0_i32, %c0_i32_0 : i32, i32
  }
  func.func @transform_9(%arg0: i32) -> (i32, i32) {
    %c0_i32 = arith.constant 0 : i32
    %c0_i32_0 = arith.constant 0 : i32
    %c0_i32_1 = arith.constant 0 : i32
    return %c0_i32, %c0_i32_0 : i32, i32
  }
  func.func @transform_10(%arg0: i32) -> (i32, i32) {
    %c0_i32 = arith.constant 0 : i32
    %c0_i32_0 = arith.constant 0 : i32
    %c0_i32_1 = arith.constant 0 : i32
    return %c0_i32, %c0_i32_0 : i32, i32
  }
  func.func @transform_11(%arg0: i32) -> (i32, i32) {
    %c0_i32 = arith.constant 0 : i32
    %c0_i32_0 = arith.constant 0 : i32
    %c0_i32_1 = arith.constant 0 : i32
    return %c0_i32, %c0_i32_0 : i32, i32
  }
  func.func @transform_12(%arg0: i32) -> (i32, i32, i32) {
    %c0_i32 = arith.constant 0 : i32
    %c0_i32_0 = arith.constant 0 : i32
    %c0_i32_1 = arith.constant 0 : i32
    return %arg0, %c0_i32, %c0_i32_0 : i32, i32, i32
  }
}

</mosaic_0001>

<bundles_post_ra>
// kernel: tpu_custom_call.1
= control target key start
LH: loop header
LB: loop body
LE: loop exit
PB: predicated region body
PF: predicated region fallthrough
CT: control target
= control target key end

     0   :  { %17 = vsyncpa [#allocation3], 0  ;;  %s1443_s0 = inlined_call_operand.vmem [shape: s32[1,8,1], index: 0, kind: input, shape index: {}]   ;;  %s1444_s1 = inlined_call_operand.hbm [shape: f32[2,8,32], index: 1, kind: input, shape index: {}]   ;;  %s1445_s2 = inlined_call_operand.vmem [shape: f32[32,96], index: 2, kind: input, shape index: {}]   ;;  %s1446_s3 = inlined_call_operand.vmem [shape: f32[32,32], index: 3, kind: input, shape index: {}]   ;;  %s1447_s4 = inlined_call_operand.vmem [shape: f32[32,64], index: 4, kind: input, shape index: {}]   ;;  %s1448_s5 = inlined_call_operand.vmem [shape: f32[1,64], index: 5, kind: input, shape index: {}]   ;;  %s1449_s6 = inlined_call_operand.vmem [shape: f32[64,32], index: 6, kind: input, shape index: {}]   ;;  %s1450_s7 = inlined_call_operand.vmem [shape: f32[1,32], index: 7, kind: input, shape index: {}]   ;;  %s1451_s8 = inlined_call_operand.vmem [shape: f32[1,32], index: 8, kind: input, shape index: {}]   ;;  %s1452_s9 = inlined_call_operand.vmem [shape: f32[1,32], index: 9, kind: input, shape index: {}]   ;;  %s1453_s10 = inlined_call_operand.vmem [shape: f32[1,32], index: 10, kind: input, shape index: {}]   ;;  %s1454_s11 = inlined_call_operand.vmem [shape: f32[1,32], index: 11, kind: input, shape index: {}]   ;;  %s1455_s12 = inlined_call_operand.hbm [shape: f32[2,8,32], index: 12, kind: output, shape index: {}]  }
   0x1   :  { %18 = vsyncpa [#allocation4], 0  ;;  %s25_s23 = sshll.u32 %s1444_s1, 4  ;;  %s1128_s24 = smov [#allocation2]   ;;  %s26_s23 = int_to_ptr.hbm [resolvable:$true] %s25_s23 }
   0x2   :  { %s27_s25 = sshll.u32 %s1128_s24, 4  ;;  %s1129_s26 = smov 128   ;;  %s28_s25 = int_to_ptr.vmem [resolvable:$true] %s27_s25 }
   0x3   :  { %s1130_s27 = smov 8  }
   0x4   :  { %33 = dma.hbm_to_vmem [thread:$0]  %s26_s23, 256, %s28_s25, [#allocation3], %s1129_s26, %s1129_s26, %s1130_s27  }
   0x5   :  { %1124 = dma.done.wait [#allocation3], 256  }
   0x6   :  { %1125 = vsyncadd [#allocation3], 4294967040  ;;  %v63_v0 = vld [vmem:[%s1445_s2 + $0x18] sm:$0xff]  ;;  %v62_v1 = vld [vmem:[%s1445_s2 + $0x10] sm:$0xff]  ;;  %vm64_vm0 = vcmask 261120   ;;  %s1131_s17 = smov 104   ;;  %v326_v41 = vlaneseq }
   0x7   :  { %83 = vmatpush.msra.mxu0 %v63_v0  ;;  %v61_v2 = vld [vmem:[%s1445_s2 + $0x8] sm:$0xff]  ;;  %v60_v3 = vld [vmem:[%s1445_s2] sm:$0xff]  ;;  %s1132_s18 = smov 120   ;;  %s1133_s2 = smov 112   ;;  %v1135_v8 = vmov 0   ;;  %vm110_vm1 = vcmask 64512  }
   0x8   :  { %v1223_v4 = vld [vmem:[#allocation2] sm:$0xff]  ;;  %v1227_v5 = vld [vmem:[#allocation2 + $0x8] sm:$0xff]  ;;  %s1134_s19 = smov 96   ;;  %1013 = vset.pattern.permute.xlu0 %v1135_v8  ;;  %1012 = vset.pattern.permute.xlu2 %v1135_v8  ;;  %v327_v42 = vand.u32 127, %v326_v41  ;;  %s1137_s22 = smov 24   ;;  %vm705_vm10 = vcmask 130048  }
   0x9   :  { %84 = vmatpush.msra.mxu0 %v62_v1  ;;  %1014 = vset.pattern.permute.xlu1 %v1135_v8  ;;  %v325_v14 = vld [vmem:[%s1443_s0] sm:$0xff]  ;;  %s1136_s0 = smov 64   ;;  %s1138_s23 = smov 16   ;;  %vm708_vm11 = vcmask 195584  }
   0xa   :  { %v328_v17 = vrot.slane %v325_v14, 1  ;;  %v335_v19 = vperm.slane %v325_v14, 0  ;;  %v330_v20 = vrot.slane %v325_v14, 3  ;;  %v334_v22 = vrot.slane %v325_v14, 7  ;;  %s955_s24 = sshll.u32 %s1455_s12, 4  ;;  %s956_s24 = int_to_ptr.hbm [resolvable:$true] %s955_s24 }
   0xb   :  { %85 = vmatpush.msra.mxu0 %v61_v2  ;;  %v329_v24 = vrot.slane %v325_v14, 2  ;;  %v333_v25 = vrot.slane %v325_v14, 6  ;;  %v332_v31 = vrot.slane %v325_v14, 5  ;;  %v331_v33 = vrot.slane %v325_v14, 4 }
   0xc   :  { %v336_v18 = vperm.slane %v328_v17, 0  ;;  %v338_v21 = vperm.slane %v330_v20, 0  ;;  %v342_v23 = vperm.slane %v334_v22, 0 }
   0xd   :  { %86 = vmatpush.msra.mxu0 %v60_v3  ;;  %v337_v27 = vperm.slane %v329_v24, 0  ;;  %v341_v28 = vperm.slane %v333_v25, 0  ;;  %v340_v32 = vperm.slane %v332_v31, 0  ;;  %v339_v34 = vperm.slane %v331_v33, 0 }
   0xe   :  { %968 = vmatmul.msk.f32.vlgmr.msra.gmra.mxu0 %vm64_vm0, %v1223_v4 }
  0x16   :  { %969 = vmatmul.msk.f32.gmra.mxu0 %vm64_vm0, %v1227_v5 }
  0x8b   :  { %v1231_v6 = vpop.f32.mrf.mxu0 }
  0x8c   :  { %104 = vrot.lane.b32.xlu1 %v1231_v6, %s1131_s17  ;;  %96 = vrot.lane.b32.xlu0 %v1231_v6, %s1132_s18 }
  0x93   :  { %v1235_v7 = vpop.f32.mrf.mxu0 }
  0x94   :  { %100 = vrot.lane.b32.xlu0 %v1231_v6, %s1133_s2  ;;  %106 = vrot.lane.b32.xlu1 %v1235_v7, %s1131_s17 }
  0x95   :  { %98 = vrot.lane.b32.xlu2 %v1235_v7, %s1132_s18 }
  0x9c   :  { %108 = vrot.lane.b32.xlu0 %v1231_v6, %s1134_s19 }
  0x9d   :  { %102 = vrot.lane.b32.xlu2 %v1235_v7, %s1133_s2 }
  0xa5   :  { %213 = vrot.lane.b32.xlu2 %v1235_v7, %s1134_s19 }
  0xef   :  { %v1248_v11 = vpop.permute.xlu2 %98 }
  0xf7   :  { %v1260_v16 = vpop.permute.xlu2 %102 }
  0xfe   :  { %v1243_v9 = vpop.permute.xlu1 %104  ;;  %v1245_v10 = vpop.permute.xlu0 %96 }
  0xff   :  { %135 = vrot.lane.b32.xlu1 %v1245_v10, %s1134_s19  ;;  %v214_v26 = vpop.permute.xlu2 %213 }
 0x106   :  { %v1250_v12 = vpop.permute.xlu0 %100  ;;  %v1252_v13 = vpop.permute.xlu1 %106 }
 0x107   :  { %161 = vrot.lane.b32.xlu0 %v1250_v12, %s1134_s19  ;;  %187 = vrot.lane.b32.xlu1 %v1243_v9, %s1134_s19 }
 0x108   :  { %291 = vrot.lane.b32.xlu2 %v1252_v13, %s1134_s19 }
 0x10e   :  { %v109_v15 = vpop.permute.xlu0 %108 }
 0x10f   :  { %970 = vmatpush.xpose.msk.msra.mxu2 %vm110_vm1, %v109_v15  ;;  %239 = vrot.lane.b32.xlu0 %v1248_v11, %s1134_s19 }
 0x110   :  { %265 = vrot.lane.b32.xlu1 %v1260_v16, %s1134_s19  ;;  %353 = vperm.xlu2 %1012, %v338_v21  }
 0x112   :  { %971 = vmatmul.msk.f32.vlgmr.msra.gmra.mxu2 %vm110_vm1, %v1231_v6 }
 0x117   :  { %347 = vperm.xlu0 %1013, %v336_v18  }
 0x118   :  { %365 = vperm.xlu2 %1012, %v342_v23   ;;  %350 = vperm.xlu1 %1014, %v337_v27   ;;  %v1020_v27 = vpack.i.bf16 %v1252_v13, %v1250_v12 }
 0x11f   :  { %344 = vperm.xlu0 %1013, %v335_v19  }
 0x120   :  { %362 = vperm.xlu2 %1012, %v341_v28   ;;  %359 = vperm.xlu1 %1014, %v340_v32  }
 0x128   :  { %356 = vperm.xlu2 %1012, %v339_v34  }
 0x162   :  { %v292_v30 = vpop.permute.xlu2 %291 }
 0x16a   :  { %v354_v39 = vpop.permute.xlu2 %353 }
 0x16b   :  { %vm370_vm3 = vcmp.ge.s32.totalorder %v327_v42, %v354_v39 }
 0x171   :  { %v136_v29 = vpop.permute.xlu1 %135 }
 0x172   :  { %972 = vmatpush.xpose.msk.msrb.mxu2 %vm110_vm1, %v136_v29  ;;  %v366_v45 = vpop.permute.xlu2 %365 }
 0x173   :  { %vm374_vm7 = vcmp.ge.s32.totalorder %v327_v42, %v366_v45 }
 0x175   :  { %973 = vmatmul.msk.f32.vlgmr.msrb.gmra.mxu2 %vm110_vm1, %v1245_v10 }
 0x176   :  { %978 = vmatpush.xpose.msk.msra.mxu2 %vm110_vm1, %v214_v26 }
 0x179   :  { %v162_v35 = vpop.permute.xlu0 %161  ;;  %v188_v36 = vpop.permute.xlu1 %187 }
 0x17a   :  { %984 = vmatpush.xpose.msk.msrb.mxu2 %vm110_vm1, %v292_v30  ;;  %974 = vmatpush.xpose.msk.msra.mxu3 %vm110_vm1, %v162_v35  ;;  %v363_v57 = vpop.permute.xlu2 %362 }
 0x17b   :  { %976 = vmatpush.xpose.msk.msra.mxu1 %vm110_vm1, %v188_v36  ;;  %vm373_vm5 = vcmp.ge.s32.totalorder %v327_v42, %v363_v57 }
 0x17d   :  { %975 = vmatmul.msk.f32.vlgmr.msra.gmra.mxu3 %vm110_vm1, %v1250_v12  ;;  %979 = vmatmul.msk.f32.vlgmr.msra.gmra.mxu2 %vm110_vm1, %v1235_v7 }
 0x17e   :  { %977 = vmatmul.msk.f32.vlgmr.msra.gmra.mxu1 %vm110_vm1, %v1243_v9 }
 0x181   :  { %v240_v37 = vpop.permute.xlu0 %239 }
 0x182   :  { %v266_v38 = vpop.permute.xlu1 %265  ;;  %980 = vmatpush.xpose.msk.msrb.mxu3 %vm110_vm1, %v240_v37  ;;  %v357_v19 = vpop.permute.xlu2 %356 }
 0x183   :  { %982 = vmatpush.xpose.msk.msrb.mxu1 %vm110_vm1, %v266_v38  ;;  %vm371_vm9 = vcmp.ge.s32.totalorder %v327_v42, %v357_v19 }
 0x185   :  { %981 = vmatmul.msk.f32.vlgmr.msrb.gmra.mxu3 %vm110_vm1, %v1248_v11  ;;  %985 = vmatmul.msk.f32.vlgmr.msrb.gmra.mxu2 %vm110_vm1, %v1252_v13 }
 0x186   :  { %983 = vmatmul.msk.f32.vlgmr.msrb.gmra.mxu1 %vm110_vm1, %v1260_v16 }
 0x189   :  { %v348_v43 = vpop.permute.xlu0 %347 }
 0x18a   :  { %vm368_vm2 = vcmp.ge.s32.totalorder %v327_v42, %v348_v43  ;;  %v351_v50 = vpop.permute.xlu1 %350 }
 0x18b   :  { %vm369_vm4 = vcmp.ge.s32.totalorder %v327_v42, %v351_v50 }
 0x191   :  { %v345_v15 = vpop.permute.xlu0 %344 }
 0x192   :  { %v360_v62 = vpop.permute.xlu1 %359  ;;  %vm367_vm8 = vcmp.ge.s32.totalorder %v327_v42, %v345_v15 }
 0x193   :  { %vm372_vm6 = vcmp.ge.s32.totalorder %v327_v42, %v360_v62 }
 0x195   :  { %v132_v40 = vpop.f32.mrf.mxu2 }
 0x196   :  { %v317_v22 = vmul.f32 0.35355338, %v132_v40 }
 0x198   :  { %v375_v24 = vsel %vm367_vm8, -1000000.0, %v317_v22 }
 0x199   :  { %v383_v26 = vsel %vm110_vm1, %v375_v24, -inf }
 0x1f8   :  { %v158_v44 = vpop.f32.mrf.mxu2 }
 0x1f9   :  { %v318_v46 = vmul.f32 0.35355338, %v158_v44 }
 0x1fb   :  { %v210_v47 = vpop.f32.mrf.mxu1  ;;  %v376_v49 = vsel %vm368_vm2, -1000000.0, %v318_v46 }
 0x1fc   :  { %v320_v48 = vmul.f32 0.35355338, %v210_v47  ;;  %v386_v51 = vsel %vm110_vm1, %v376_v49, -inf }
 0x1fd   :  { %387 = vmax.xlane.f32.xlu0 %v386_v51 }
 0x1fe   :  { %v378_v52 = vsel %vm370_vm3, -1000000.0, %v320_v48  ;;  %vm855_vm3 = vcmask 523264  }
 0x1ff   :  { %v392_v53 = vsel %vm110_vm1, %v378_v52, -inf }
 0x200   :  { %393 = vmax.xlane.f32.xlu1 %v392_v53  ;;  %v184_v54 = vpop.f32.mrf.mxu3  ;;  %v236_v56 = vpop.f32.mrf.mxu2 }
 0x201   :  { %v319_v55 = vmul.f32 0.35355338, %v184_v54  ;;  %v321_v20 = vmul.f32 0.35355338, %v236_v56 }
 0x203   :  { %v288_v58 = vpop.f32.mrf.mxu1  ;;  %v377_v59 = vsel %vm369_vm4, -1000000.0, %v319_v55  ;;  %v1294_v23 = vsel %vm371_vm9, -1000000.0, %v321_v20 }
 0x204   :  { %v323_v60 = vmul.f32 0.35355338, %v288_v58  ;;  %v389_v61 = vsel %vm110_vm1, %v377_v59, -inf  ;;  %v395_v25 = vsel %vm110_vm1, %v1294_v23, -inf }
 0x205   :  { %390 = vmax.xlane.f32.xlu2 %v389_v61 }
 0x206   :  { %v381_v63 = vsel %vm373_vm5, -1000000.0, %v323_v60  ;;  %v1025_v60 = vpack.i.bf16 %v1260_v16, %v1248_v11 }
 0x207   :  { %v401_v0 = vsel %vm110_vm1, %v381_v63, -inf }
 0x208   :  { %402 = vmax.xlane.f32.xlu0 %v401_v0  ;;  %v262_v1 = vpop.f32.mrf.mxu3  ;;  %v314_v3 = vpop.f32.mrf.mxu2 }
 0x209   :  { %v322_v2 = vmul.f32 0.35355338, %v262_v1  ;;  %v324_v8 = vmul.f32 0.35355338, %v314_v3 }
 0x20b   :  { %v380_v14 = vsel %vm372_vm6, -1000000.0, %v322_v2  ;;  %v382_v17 = vsel %vm374_vm7, -1000000.0, %v324_v8 }
 0x20c   :  { %v398_v18 = vsel %vm110_vm1, %v380_v14, -inf  ;;  %v404_v21 = vsel %vm110_vm1, %v382_v17, -inf }
 0x20d   :  { %399 = vmax.xlane.f32.xlu2 %v398_v18  ;;  %405 = vmax.xlane.f32.xlu1 %v404_v21 }
 0x215   :  { %396 = vmax.xlane.f32.xlu2 %v395_v25  ;;  %384 = vmax.xlane.f32.xlu1 %v383_v26 }
 0x22d   :  { %1021 = vrot.lane.b32.xlu2 %v1020_v27, %s1136_s0 }
 0x270   :  { %v388_v28 = vpop.xlane.xlu0 %387 }
 0x271   :  { %v408_v29 = vsub.f32 %v376_v49, %v388_v28 }
 0x273   :  { %v394_v30 = vpop.xlane.xlu1 %393  ;;  %v417_v31 = vmul.f32 1.442695, %v408_v29 }
 0x274   :  { %v410_v32 = vsub.f32 %v378_v52, %v394_v30 }
 0x275   :  { %1036 = vpow2.f32 %v417_v31 }
 0x276   :  { %v421_v33 = vmul.f32 1.442695, %v410_v32 }
 0x278   :  { %1038 = vpow2.f32 %v421_v33  ;;  %v391_v34 = vpop.xlane.xlu2 %390 }
 0x279   :  { %v409_v35 = vsub.f32 %v377_v59, %v391_v34  ;;  %v1015_v59 = vpack.i.bf16 %v1245_v10, %v1243_v9 }
 0x27b   :  { %v1302_v36 = vpop.eup %1036  ;;  %v419_v37 = vmul.f32 1.442695, %v409_v35  ;;  %v403_v38 = vpop.xlane.xlu0 %402 }
 0x27c   :  { %v413_v39 = vsub.f32 %v381_v63, %v403_v38  ;;  %v434_v12 = vsel %vm110_vm1, %v1302_v36, 0.0 }
 0x27d   :  { %1040 = vpow2.f32 %v419_v37  ;;  %435 = vadd.xlane.f32.xlu1 %v434_v12 }
 0x27e   :  { %v1306_v13 = vpop.eup %1038  ;;  %v427_v40 = vmul.f32 1.442695, %v413_v39 }
 0x27f   :  { %v440_v41 = vsel %vm110_vm1, %v1306_v13, 0.0 }
 0x280   :  { %441 = vadd.xlane.f32.xlu0 %v440_v41  ;;  %1042 = vpow2.f32 %v427_v40  ;;  %v400_v42 = vpop.xlane.xlu2 %399  ;;  %v406_v44 = vpop.xlane.xlu1 %405 }
 0x281   :  { %v412_v43 = vsub.f32 %v380_v14, %v400_v42  ;;  %v414_v45 = vsub.f32 %v382_v17, %v406_v44 }
 0x283   :  { %v1041_v46 = vpop.eup %1040  ;;  %v425_v47 = vmul.f32 1.442695, %v412_v43  ;;  %v429_v48 = vmul.f32 1.442695, %v414_v45 }
 0x284   :  { %v437_v49 = vsel %vm110_vm1, %v1041_v46, 0.0 }
 0x285   :  { %1044 = vpow2.f32 %v425_v47  ;;  %438 = vadd.xlane.f32.xlu2 %v437_v49  ;;  %v714_v47 = vld [vmem:[%s1446_s3 + $0x18] sm:$0xff]  ;;  %v712_v49 = vld [vmem:[%s1446_s3 + $0x8] sm:$0xff] }
 0x286   :  { %v1311_v50 = vpop.eup %1042  ;;  %1046 = vpow2.f32 %v429_v48  ;;  %v713_v48 = vld [vmem:[%s1446_s3 + $0x10] sm:$0xff] }
 0x287   :  { %v449_v51 = vsel %vm110_vm1, %v1311_v50, 0.0 }
 0x288   :  { %450 = vadd.xlane.f32.xlu0 %v449_v51  ;;  %v397_v52 = vpop.xlane.xlu2 %396  ;;  %v385_v61 = vpop.xlane.xlu1 %384 }
 0x289   :  { %v407_v62 = vsub.f32 %v375_v24, %v385_v61  ;;  %v411_v9 = vsub.f32 %v1294_v23, %v397_v52 }
 0x28b   :  { %v1315_v53 = vpop.eup %1044  ;;  %v415_v63 = vmul.f32 1.442695, %v407_v62  ;;  %v423_v1 = vmul.f32 1.442695, %v411_v9 }
 0x28c   :  { %v1047_v54 = vpop.eup %1046  ;;  %v446_v55 = vsel %vm110_vm1, %v1315_v53, 0.0 }
 0x28d   :  { %447 = vadd.xlane.f32.xlu2 %v446_v55  ;;  %v452_v56 = vsel %vm110_vm1, %v1047_v54, 0.0  ;;  %1048 = vpow2.f32 %v415_v63 }
 0x28e   :  { %1050 = vpow2.f32 %v423_v1 }
 0x290   :  { %453 = vadd.xlane.f32.xlu0 %v452_v56  ;;  %v1022_v57 = vpop.permute.xlu2 %1021 }
 0x291   :  { %v1023_v58 = vunpack.i.l.bf16 %v1022_v57  ;;  %v1024_v26 = vunpack.i.h.bf16 %v1022_v57 }
 0x293   :  { %544 = vmatpush.msra.mxu1 %v1023_v58  ;;  %v1049_v0 = vpop.eup %1048 }
 0x294   :  { %v431_v10 = vsel %vm110_vm1, %v1049_v0, 0.0  ;;  %v1051_v11 = vpop.eup %1050 }
 0x295   :  { %v443_v16 = vsel %vm110_vm1, %v1051_v11, 0.0 }
 0x296   :  { %1016 = vrot.lane.b32.xlu1 %v1015_v59, %s1136_s0 }
 0x2a4   :  { %1026 = vrot.lane.b32.xlu0 %v1025_v60, %s1136_s0 }
 0x2a5   :  { %471 = vrot.lane.b32.xlu2 %v1231_v6, %s1136_s0 }
 0x2ad   :  { %575 = vrot.lane.b32.xlu2 %v1235_v7, %s1136_s0 }
 0x2c0   :  { %432 = vadd.xlane.f32.xlu1 %v431_v10 }
 0x2ce   :  { %444 = vadd.xlane.f32.xlu0 %v443_v16 }
 0x2f0   :  { %v436_v7 = vpop.xlane.xlu1 %435 }
 0x2f3   :  { %v442_v6 = vpop.xlane.xlu0 %441 }
 0x2f8   :  { %v439_v2 = vpop.xlane.xlu2 %438 }
 0x2f9   :  { %1052 = vrcp.f32 %v439_v2 }
 0x2fa   :  { %1054 = vrcp.f32 %v436_v7 }
 0x2fb   :  { %v451_v3 = vpop.xlane.xlu0 %450  ;;  %1056 = vrcp.f32 %v442_v6 }
 0x2ff   :  { %v1053_v8 = vpop.eup %1052 }
 0x300   :  { %v465_v14 = vmul.f32 %v1053_v8, %v1041_v46  ;;  %v448_v15 = vpop.xlane.xlu2 %447  ;;  %v1055_v17 = vpop.eup %1054  ;;  %v807_v8 = vld [vmem:[%s1447_s4 + $0x18] sm:$0xff] }
 0x301   :  { %v1057_v19 = vpop.eup %1056  ;;  %v464_v25 = vmul.f32 %v1055_v17, %v1302_v36  ;;  %v804_v17 = vld [vmem:[%s1447_s4] sm:$0xff] }
 0x302   :  { %988 = vmatmul.msk.f32.vlgmr.msra.gmra.mxu1 %vm110_vm1, %v465_v14  ;;  %v466_v24 = vmul.f32 %v1057_v19, %v1306_v13  ;;  %v805_v14 = vld [vmem:[%s1447_s4 + $0x8] sm:$0xff] }
 0x303   :  { %v454_v18 = vpop.xlane.xlu0 %453 }
 0x304   :  { %1058 = vrcp.f32 %v454_v18 }
 0x305   :  { %1060 = vrcp.f32 %v451_v3 }
 0x306   :  { %1062 = vrcp.f32 %v448_v15 }
 0x308   :  { %v472_v20 = vpop.permute.xlu2 %471  ;;  %v1017_v21 = vpop.permute.xlu1 %1016 }
 0x309   :  { %v1018_v22 = vunpack.i.l.bf16 %v1017_v21  ;;  %492 = vmatpush.msra.mxu3 %v472_v20  ;;  %v1019_v23 = vunpack.i.h.bf16 %v1017_v21 }
 0x30a   :  { %v1059_v27 = vpop.eup %1058 }
 0x30b   :  { %518 = vmatpush.msrb.mxu0 %v1019_v23  ;;  %570 = vmatpush.msra.mxu2 %v1018_v22  ;;  %v470_v29 = vmul.f32 %v1059_v27, %v1047_v54  ;;  %v1061_v30 = vpop.eup %1060  ;;  %v849_v27 = vld [vmem:[%s1449_s6 + $0x30] sm:$0xff] }
 0x30c   :  { %987 = vmatmul.msk.f32.vlgmr.msrb.gmra.mxu0 %vm110_vm1, %v464_v25  ;;  %989 = vmatmul.msk.f32.vlgmr.msra.gmra.mxu2 %vm110_vm1, %v466_v24  ;;  %v1063_v31 = vpop.eup %1062  ;;  %v469_v35 = vmul.f32 %v1061_v30, %v1311_v50  ;;  %v711_v50 = vld [vmem:[%s1446_s3] sm:$0xff] }
 0x30d   :  { %674 = vmatpush.msrb.mxu2 %v1024_v26  ;;  %v468_v36 = vmul.f32 %v1063_v31, %v1315_v53  ;;  %v850_v26 = vld [vmem:[%s1449_s6 + $0x38] sm:$0xff]  ;;  %v848_v31 = vld [vmem:[%s1449_s6 + $0x28] sm:$0xff] }
 0x310   :  { %v576_v28 = vpop.permute.xlu2 %575 }
 0x311   :  { %596 = vmatpush.msrb.mxu3 %v576_v28 }
 0x314   :  { %993 = vmatmul.msk.f32.vlgmr.msrb.gmra.mxu2 %vm110_vm1, %v470_v29 }
 0x316   :  { %v1027_v32 = vpop.permute.xlu0 %1026 }
 0x317   :  { %v1029_v33 = vunpack.i.h.bf16 %v1027_v32  ;;  %v1028_v34 = vunpack.i.l.bf16 %v1027_v32 }
 0x319   :  { %622 = vmatpush.msra.mxu0 %v1028_v34  ;;  %648 = vmatpush.msrb.mxu1 %v1029_v33  ;;  %v847_v33 = vld [vmem:[%s1449_s6 + $0x20] sm:$0xff] }
 0x31a   :  { %991 = vmatmul.msk.f32.vlgmr.msra.gmra.mxu0 %vm110_vm1, %v468_v36  ;;  %992 = vmatmul.msk.f32.vlgmr.msrb.gmra.mxu1 %vm110_vm1, %v469_v35 }
 0x31b   :  { %830 = vmatpush.msrb.mxu0 %v807_v8  ;;  %870 = vmatpush.msra.mxu1 %v850_v26 }
 0x31d   :  { %871 = vmatpush.msra.mxu1 %v849_v27 }
 0x31f   :  { %872 = vmatpush.msra.mxu1 %v848_v31 }
 0x321   :  { %873 = vmatpush.msra.mxu1 %v847_v33 }
 0x333   :  { %v433_v37 = vpop.xlane.xlu1 %432 }
 0x334   :  { %1064 = vrcp.f32 %v433_v37  ;;  %v846_v37 = vld [vmem:[%s1449_s6 + $0x18] sm:$0xff] }
 0x335   :  { %874 = vmatpush.msra.mxu1 %v846_v37 }
 0x33a   :  { %v1065_v38 = vpop.eup %1064 }
 0x33b   :  { %v463_v39 = vmul.f32 %v1065_v38, %v1049_v0 }
 0x33d   :  { %986 = vmatmul.msk.f32.vlgmr.msra.gmra.mxu3 %vm110_vm1, %v463_v39 }
 0x33e   :  { %733 = vmatpush.msra.mxu3 %v714_v47  ;;  %v1031_v47 = vld [vmem:[%s1452_s9] ss:$0 sm:$0xff] }
 0x340   :  { %734 = vmatpush.msra.mxu3 %v713_v48 }
 0x341   :  { %v445_v12 = vpop.xlane.xlu0 %444 }
 0x342   :  { %1066 = vrcp.f32 %v445_v12  ;;  %735 = vmatpush.msra.mxu3 %v712_v49 }
 0x344   :  { %736 = vmatpush.msra.mxu3 %v711_v50 }
 0x348   :  { %v1067_v13 = vpop.eup %1066 }
 0x349   :  { %v467_v40 = vmul.f32 %v1067_v13, %v1051_v11 }
 0x34b   :  { %990 = vmatmul.msk.f32.vlgmr.msrb.gmra.mxu3 %vm110_vm1, %v467_v40 }
 0x37f   :  { %v546_v42 = vpop.f32.mrf.mxu1 }
 0x389   :  { %v520_v41 = vpop.f32.mrf.mxu0 }
 0x38a   :  { %681 = vrot.lane.b32.xlu2 %v520_v41, %s1130_s27 }
 0x38f   :  { %v572_v43 = vpop.f32.mrf.mxu2 }
 0x390   :  { %697 = vrot.lane.b32.xlu1 %v572_v43, %s1137_s22 }
 0x392   :  { %689 = vrot.lane.b32.xlu2 %v546_v42, %s1138_s23  ;;  %v1030_v42 = vld [vmem:[%s1451_s8] ss:$0 sm:$0xff] }
 0x397   :  { %v650_v44 = vpop.f32.mrf.mxu1  ;;  %v624_v45 = vpop.f32.mrf.mxu0 }
 0x398   :  { %691 = vrot.lane.b32.xlu0 %v650_v44, %s1138_s23  ;;  %v676_v46 = vpop.f32.mrf.mxu2 }
 0x39a   :  { %683 = vrot.lane.b32.xlu2 %v624_v45, %s1130_s27 }
 0x3a2   :  { %699 = vrot.lane.b32.xlu2 %v676_v46, %s1137_s22 }
 0x3c0   :  { %v494_v53 = vpop.f32.mrf.mxu3 }
 0x3ce   :  { %v598_v59 = vpop.f32.mrf.mxu3 }
 0x3e4   :  { %v682_v51 = vpop.permute.xlu2 %681 }
 0x3e5   :  { %v703_v54 = vsel %vm110_vm1, %v494_v53, %v682_v51 }
 0x3ec   :  { %v690_v52 = vpop.permute.xlu2 %689 }
 0x3ed   :  { %v706_v56 = vsel %vm705_vm10, %v703_v54, %v690_v52 }
 0x3f4   :  { %v684_v55 = vpop.permute.xlu2 %683 }
 0x3f5   :  { %v704_v60 = vsel %vm110_vm1, %v598_v59, %v684_v55  ;;  %v844_v59 = vld [vmem:[%s1449_s6 + $0x8] sm:$0xff] }
 0x3fc   :  { %v700_v62 = vpop.permute.xlu2 %699 }
 0x402   :  { %v698_v57 = vpop.permute.xlu1 %697 }
 0x403   :  { %v709_v58 = vsel %vm708_vm11, %v706_v56, %v698_v57 }
 0x404   :  { %994 = vmatmul.msk.f32.vlgmr.msra.gmra.mxu3 %vm64_vm0, %v709_v58  ;;  %v845_v58 = vld [vmem:[%s1449_s6 + $0x10] sm:$0xff] }
 0x405   :  { %875 = vmatpush.msra.mxu1 %v845_v58 }
 0x407   :  { %876 = vmatpush.msra.mxu1 %v844_v59 }
 0x40a   :  { %v692_v61 = vpop.permute.xlu0 %691 }
 0x40b   :  { %v707_v63 = vsel %vm705_vm10, %v704_v60, %v692_v61  ;;  %v843_v60 = vld [vmem:[%s1449_s6] sm:$0xff] }
 0x40c   :  { %v710_v0 = vsel %vm708_vm11, %v707_v63, %v700_v62  ;;  %877 = vmatpush.msra.mxu1 %v843_v60  ;;  %v1032_v61 = vld [vmem:[%s1448_s5] ss:$0 sm:$0xff] }
 0x40d   :  { %995 = vmatmul.msk.f32.gmra.mxu3 %vm64_vm0, %v710_v0 }
 0x487   :  { %v738_v9 = vpop.f32.mrf.mxu3 }
 0x488   :  { %v739_v10 = vadd.f32 %v738_v9, %v1223_v4 }
 0x48a   :  { %v746_v1 = vsel %vm64_vm0, %v739_v10, 0.0  ;;  %v752_v11 = vmul.f32 %v739_v10, %v739_v10 }
 0x48b   :  { %747 = vadd.xlane.f32.xlu2 %v746_v1 }
 0x48c   :  { %v754_v16 = vsel %vm64_vm0, %v752_v11, 0.0  ;;  %v1033_v11 = vld [vmem:[%s1450_s7] ss:$0 sm:$0xff] }
 0x48d   :  { %755 = vadd.xlane.f32.xlu1 %v754_v16 }
 0x490   :  { %v741_v6 = vpop.f32.mrf.mxu3 }
 0x491   :  { %v1367_v2 = vadd.f32 %v741_v6, %v1227_v5  ;;  %v806_v5 = vld [vmem:[%s1447_s4 + $0x10] sm:$0xff] }
 0x492   :  { %831 = vmatpush.msrb.mxu0 %v806_v5 }
 0x493   :  { %v749_v3 = vsel %vm64_vm0, %v1367_v2, 0.0  ;;  %v753_v7 = vmul.f32 %v1367_v2, %v1367_v2 }
 0x494   :  { %750 = vadd.xlane.f32.xlu0 %v749_v3  ;;  %832 = vmatpush.msrb.mxu0 %v805_v14 }
 0x495   :  { %v757_v4 = vsel %vm64_vm0, %v753_v7, 0.0 }
 0x496   :  { %758 = vadd.xlane.f32.xlu2 %v757_v4  ;;  %833 = vmatpush.msrb.mxu0 %v804_v17 }
 0x4fe   :  { %v748_v15 = vpop.xlane.xlu2 %747 }
 0x4ff   :  { %v760_v18 = vmul.f32 0.03125, %v748_v15 }
 0x500   :  { %v756_v19 = vpop.xlane.xlu1 %755 }
 0x501   :  { %v764_v20 = vmul.f32 %v760_v18, %v760_v18  ;;  %v762_v21 = vmul.f32 0.03125, %v756_v19  ;;  %v768_v41 = vsub.f32 %v739_v10, %v760_v18 }
 0x503   :  { %v766_v22 = vsub.f32 %v762_v21, %v764_v20 }
 0x505   :  { %v770_v23 = vadd.f32 1e-05, %v766_v22 }
 0x507   :  { %1068 = vrsqrt.f32 %v770_v23  ;;  %v751_v24 = vpop.xlane.xlu0 %750  ;;  %vm778_vm13 = vweird.f32 %v770_v23 }
 0x508   :  { %v761_v25 = vmul.f32 0.03125, %v751_v24 }
 0x509   :  { %v759_v28 = vpop.xlane.xlu2 %758 }
 0x50a   :  { %v765_v29 = vmul.f32 %v761_v25, %v761_v25  ;;  %v763_v30 = vmul.f32 0.03125, %v759_v28  ;;  %v769_v53 = vsub.f32 %v1367_v2, %v761_v25 }
 0x50c   :  { %v767_v32 = vsub.f32 %v763_v30, %v765_v29 }
 0x50d   :  { %v1069_v34 = vpop.eup %1068 }
 0x50e   :  { %v773_v35 = vmul.f32 %v1069_v34, %v770_v23  ;;  %v771_v36 = vadd.f32 1e-05, %v767_v32  ;;  %vm779_vm12 = vweird.f32 %v1069_v34 }
 0x50f   :  { %vm780_vm14 = vmor %vm778_vm13, %vm779_vm12 }
 0x510   :  { %v774_v38 = vmul.f32 %v1069_v34, %v773_v35  ;;  %1070 = vrsqrt.f32 %v771_v36  ;;  %vm788_vm1 = vweird.f32 %v771_v36 }
 0x512   :  { %v775_v39 = vmul.f32 0.5, %v774_v38 }
 0x514   :  { %v776_v12 = vsub.f32 1.5, %v775_v39 }
 0x516   :  { %v1071_v13 = vpop.eup %1070  ;;  %v777_v40 = vmul.f32 %v1069_v34, %v776_v12 }
 0x517   :  { %v783_v43 = vmul.f32 %v1071_v13, %v771_v36  ;;  %vm789_vm15 = vweird.f32 %v1071_v13 }
 0x518   :  { %v781_v44 = vsel %vm780_vm14, %v1069_v34, %v777_v40  ;;  %vm790_vm2 = vmor %vm788_vm1, %vm789_vm15  ;;  %v1034_v40 = vld [vmem:[%s1453_s10] ss:$0 sm:$0xff]  ;;  %s1139_s10 = smov [#allocation5]  }
 0x519   :  { %v792_v45 = vmul.f32 %v781_v44, %v768_v41  ;;  %v784_v46 = vmul.f32 %v1071_v13, %v783_v43  ;;  %v1035_v44 = vld [vmem:[%s1454_s11] ss:$0 sm:$0xff]  ;;  %s953_s22 = sshll.u32 %s1139_s10, 4  ;;  %s954_s22 = int_to_ptr.vmem [resolvable:$true] %s953_s22 }
 0x51b   :  { %v797_v48 = vmul.f32 %v1030_v42, %v792_v45  ;;  %v785_v49 = vmul.f32 0.5, %v784_v46 }
 0x51d   :  { %v786_v50 = vsub.f32 1.5, %v785_v49  ;;  %v802_v51 = vadd.f32 %v1031_v47, %v797_v48 }
 0x51f   :  { %v787_v52 = vmul.f32 %v1071_v13, %v786_v50  ;;  %996 = vmatmul.msk.f32.vlgmr.msrb.gmra.mxu0 %vm64_vm0, %v802_v51 }
 0x521   :  { %v791_v54 = vsel %vm790_vm2, %v1071_v13, %v787_v52 }
 0x522   :  { %v793_v55 = vmul.f32 %v791_v54, %v769_v53 }
 0x524   :  { %v798_v56 = vmul.f32 %v1030_v42, %v793_v55 }
 0x526   :  { %v803_v57 = vadd.f32 %v1031_v47, %v798_v56 }
 0x528   :  { %997 = vmatmul.msk.f32.gmra.mxu0 %vm64_vm0, %v803_v57 }
 0x59c   :  { %v835_v62 = vpop.f32.mrf.mxu0 }
 0x59d   :  { %v836_v63 = vadd.f32 %v1032_v61, %v835_v62 }
 0x59f   :  { %v841_v0 = vmax.f32 %v836_v63, 0.0 }
 0x5a1   :  { %998 = vmatmul.msk.f32.vlgmr.msra.gmra.mxu1 %vm855_vm3, %v841_v0 }
 0x5a5   :  { %v838_v9 = vpop.f32.mrf.mxu0 }
 0x5a6   :  { %v839_v10 = vadd.f32 %v1032_v61, %v838_v9 }
 0x5a8   :  { %v842_v1 = vmax.f32 %v839_v10, 0.0 }
 0x5aa   :  { %999 = vmatmul.msk.f32.gmra.mxu1 %vm855_vm3, %v842_v1 }
 0x61e   :  { %v879_v16 = vpop.f32.mrf.mxu1 }
 0x61f   :  { %v880_v6 = vadd.f32 %v1033_v11, %v879_v16 }
 0x621   :  { %v885_v2 = vadd.f32 %v880_v6, %v802_v51 }
 0x623   :  { %v889_v3 = vsel %vm64_vm0, %v885_v2, 0.0  ;;  %v895_v7 = vmul.f32 %v885_v2, %v885_v2 }
 0x624   :  { %890 = vadd.xlane.f32.xlu1 %v889_v3 }
 0x625   :  { %v897_v4 = vsel %vm64_vm0, %v895_v7, 0.0 }
 0x626   :  { %898 = vadd.xlane.f32.xlu0 %v897_v4 }
 0x627   :  { %v882_v8 = vpop.f32.mrf.mxu1 }
 0x628   :  { %v883_v5 = vadd.f32 %v1033_v11, %v882_v8 }
 0x62a   :  { %v886_v14 = vadd.f32 %v883_v5, %v803_v57 }
 0x62c   :  { %v892_v15 = vsel %vm64_vm0, %v886_v14, 0.0  ;;  %v896_v17 = vmul.f32 %v886_v14, %v886_v14 }
 0x62d   :  { %893 = vadd.xlane.f32.xlu2 %v892_v15 }
 0x62e   :  { %v900_v18 = vsel %vm64_vm0, %v896_v17, 0.0 }
 0x62f   :  { %901 = vadd.xlane.f32.xlu1 %v900_v18 }
 0x697   :  { %v891_v19 = vpop.xlane.xlu1 %890 }
 0x698   :  { %v903_v20 = vmul.f32 0.03125, %v891_v19 }
 0x699   :  { %v899_v21 = vpop.xlane.xlu0 %898 }
 0x69a   :  { %v907_v22 = vmul.f32 %v903_v20, %v903_v20  ;;  %v905_v23 = vmul.f32 0.03125, %v899_v21  ;;  %v911_v12 = vsub.f32 %v885_v2, %v903_v20 }
 0x69c   :  { %v909_v24 = vsub.f32 %v905_v23, %v907_v22 }
 0x69e   :  { %v913_v25 = vadd.f32 1e-05, %v909_v24 }
 0x6a0   :  { %1072 = vrsqrt.f32 %v913_v25  ;;  %v894_v26 = vpop.xlane.xlu2 %893  ;;  %vm921_vm5 = vweird.f32 %v913_v25 }
 0x6a1   :  { %v904_v27 = vmul.f32 0.03125, %v894_v26 }
 0x6a2   :  { %v902_v28 = vpop.xlane.xlu1 %901 }
 0x6a3   :  { %v908_v29 = vmul.f32 %v904_v27, %v904_v27  ;;  %v906_v30 = vmul.f32 0.03125, %v902_v28  ;;  %v912_v50 = vsub.f32 %v886_v14, %v904_v27 }
 0x6a5   :  { %v910_v31 = vsub.f32 %v906_v30, %v908_v29 }
 0x6a6   :  { %v1073_v32 = vpop.eup %1072 }
 0x6a7   :  { %v916_v33 = vmul.f32 %v1073_v32, %v913_v25  ;;  %v914_v34 = vadd.f32 1e-05, %v910_v31  ;;  %vm922_vm4 = vweird.f32 %v1073_v32 }
 0x6a8   :  { %vm923_vm6 = vmor %vm921_vm5, %vm922_vm4 }
 0x6a9   :  { %v917_v35 = vmul.f32 %v1073_v32, %v916_v33  ;;  %1074 = vrsqrt.f32 %v914_v34  ;;  %vm931_vm8 = vweird.f32 %v914_v34 }
 0x6ab   :  { %v918_v36 = vmul.f32 0.5, %v917_v35 }
 0x6ad   :  { %v919_v37 = vsub.f32 1.5, %v918_v36 }
 0x6af   :  { %v1075_v38 = vpop.eup %1074  ;;  %v920_v39 = vmul.f32 %v1073_v32, %v919_v37 }
 0x6b0   :  { %v926_v13 = vmul.f32 %v1075_v38, %v914_v34  ;;  %vm932_vm7 = vweird.f32 %v1075_v38 }
 0x6b1   :  { %v924_v41 = vsel %vm923_vm6, %v1073_v32, %v920_v39  ;;  %vm933_vm9 = vmor %vm931_vm8, %vm932_vm7 }
 0x6b2   :  { %v935_v42 = vmul.f32 %v924_v41, %v911_v12  ;;  %v927_v43 = vmul.f32 %v1075_v38, %v926_v13 }
 0x6b4   :  { %v928_v45 = vmul.f32 0.5, %v927_v43  ;;  %v940_v46 = vmul.f32 %v1034_v40, %v935_v42 }
 0x6b6   :  { %v929_v47 = vsub.f32 1.5, %v928_v45  ;;  %v945_v48 = vadd.f32 %v1035_v44, %v940_v46 }
 0x6b8   :  { %v930_v49 = vmul.f32 %v1075_v38, %v929_v47  ;;  %947 = vst.msk [vmem:[#allocation5] sm:$0xff] %vm64_vm0, %v945_v48 }
 0x6ba   :  { %v934_v51 = vsel %vm933_vm9, %v1075_v38, %v930_v49 }
 0x6bb   :  { %v936_v52 = vmul.f32 %v934_v51, %v912_v50 }
 0x6bd   :  { %v941_v53 = vmul.f32 %v1034_v40, %v936_v52 }
 0x6bf   :  { %v946_v54 = vadd.f32 %v1035_v44, %v941_v53 }
 0x6c1   :  { %948 = vst.msk [vmem:[#allocation5 + $0x8] sm:$0xff] %vm64_vm0, %v946_v54 }
 0x6c2   :  { %961 = dma.vmem_to_hbm [thread:$0]  %s954_s22, 256, %s956_s24, [#allocation4], %s1129_s26, %s1129_s26, %s1130_s27  }
 0x6c3   :  { %1126 = dma.done.wait [#allocation4], 256  }
 0x6c4   :  { %1127 = vsyncadd [#allocation4], 4294967040 }
 0x6c5   :  { %966 = vsyncpa [#allocation3], 1 }
 0x6c6   :  { %967 = vsyncpa [#allocation4], 1 }

</bundles_post_ra>
